<compile_context>
chip_gen: v7x
topology: tpu7x:2x2x1
jax: 0.10.0
libtpu: 0.0.40
codegen_flags: <defaults>
</compile_context>

<pallas_src>
import jax
import jax.numpy as jnp
from jax.experimental import pallas as pl
from jax.experimental.pallas import tpu as pltpu

D_IN, D_HID, D_OUT = 784, 256, 10
K_PAD, N_PAD = 896, 128          # 7*128 contraction pad (weights only), lane-dense fc2


def _round_up(x, m):
    return (x + m - 1) // m * m


def _mlp_kernel(x_ref, w1_ref, b1_ref, w2_ref, b2_ref, o_ref, xs_ref):
    tb = xs_ref.shape[0]
    # Exact-zero fill of the contraction tail (cols 784:896); done every step so it
    # is correct no matter which core / grid index touches this scratch first.
    xs_ref[:, D_IN:] = jnp.zeros((tb, K_PAD - D_IN), jnp.bfloat16)
    # Cast activations to bf16 inside VMEM (HBM activation traffic stays f32, read once).
    xs_ref[:, :D_IN] = x_ref[...].astype(jnp.bfloat16)

    # fc1 (bf16 operands, f32 MXU accumulation) + bias + ReLU
    h = jnp.dot(xs_ref[...], w1_ref[...], preferred_element_type=jnp.float32)
    h = jnp.maximum(h + b1_ref[...], 0.0)                                  # (TB, 256) f32

    # fc2 (cast hidden to bf16 for the MXU), bias add in f32, keep 10 real logits.
    out = jnp.dot(h.astype(jnp.bfloat16), w2_ref[...],
                  preferred_element_type=jnp.float32) + b2_ref[...]        # (TB, 128) f32
    o_ref[...] = out[:, :D_OUT].astype(o_ref.dtype)                        # (TB, 10)


def net_forward(x_nchw, w1, b1, w2, b2, *, n_steps=4, tb_cap=512):
    """Fused forward: flatten -> fc1 -> relu -> fc2.

    x_nchw : (B, 1, 28, 28) float32
    w1     : (784, 256)  (PyTorch fc1.weight.T)
    b1     : (256,)
    w2     : (256, 10)   (PyTorch fc2.weight.T)
    b2     : (10,)
    returns: (B, 10) float32
    """
    B = x_nchw.shape[0]

    # nn.Flatten: metadata-only reshape; activations stay f32 in HBM (no extra pass).
    x_flat = x_nchw.reshape(B, D_IN)

    # Weight prep is trace-time / tiny (~0.5 MiB): pad K 784->896 and N 10->128, cast bf16.
    # TODO(synk): small-batch serving is weight-DMA bound: use int8 weights (per-channel
    # scales applied after the f32 accumulate) on v5e/v6e, fp8 or cross-call weight
    # residency (P10) on v7x, and pre-pad/keep weights resident across calls.
    w1_p = jnp.pad(w1, ((0, K_PAD - D_IN), (0, 0))).astype(jnp.bfloat16)
    w2_p = jnp.pad(w2, ((0, 0), (0, N_PAD - D_OUT))).astype(jnp.bfloat16)
    b1_2d = b1.reshape(1, D_HID).astype(jnp.float32)
    b2_2d = jnp.pad(b2, (0, N_PAD - D_OUT)).reshape(1, N_PAD).astype(jnp.float32)

    # Batch tile from cdiv(B, n_steps): bounded batch padding, >= n_steps grid steps at
    # large B (DMA/compute overlap + v7x megacore), capped so the footprint (~6 MiB at
    # TB=512 with f32 activation blocks) fits the default scoped VMEM on all gens.
    TB = max(8, min(tb_cap, _round_up(pl.cdiv(B, n_steps), 8)))
    B_pad = _round_up(B, TB)
    if B_pad != B:
        x_flat = jnp.pad(x_flat, ((0, B_pad - B), (0, 0)))

    # Note: resident weights keep default double-buffering (~0.5 MiB extra); with ~6 MiB
    # total VMEM use there is ample headroom, so pl.Buffered(1) is intentionally omitted.
    out = pl.pallas_call(
        _mlp_kernel,
        out_shape=jax.ShapeDtypeStruct((B_pad, D_OUT), jnp.float32),
        grid=(B_pad // TB,),
        in_specs=[
            pl.BlockSpec((TB, D_IN), lambda i: (i, 0)),         # activations: tiled, f32
            pl.BlockSpec((K_PAD, D_HID), lambda i: (0, 0)),     # w1: VMEM-resident
            pl.BlockSpec((1, D_HID), lambda i: (0, 0)),         # b1: resident
            pl.BlockSpec((D_HID, N_PAD), lambda i: (0, 0)),     # w2: resident
            pl.BlockSpec((1, N_PAD), lambda i: (0, 0)),         # b2: resident
        ],
        out_specs=pl.BlockSpec((TB, D_OUT), lambda i: (i, 0)),  # (TB, 10) f32 logits
        scratch_shapes=[pltpu.VMEM((TB, K_PAD), jnp.bfloat16)], # padded bf16 activations
        compiler_params=pltpu.CompilerParams(
            dimension_semantics=("parallel",)),
    )(x_flat, w1_p, b1_2d, w2_p, b2_2d)

    return out[:B] if B_pad != B else out


def init_params(key):
    """Deterministic init mimicking nn.Linear default (uniform +-1/sqrt(fan_in))."""
    k1, k2, k3, k4 = jax.random.split(key, 4)
    bound1 = 1.0 / jnp.sqrt(784.0)
    bound2 = 1.0 / jnp.sqrt(256.0)
    w1 = jax.random.uniform(k1, (784, 256), jnp.float32, -bound1, bound1)
    b1 = jax.random.uniform(k2, (256,), jnp.float32, -bound1, bound1)
    w2 = jax.random.uniform(k3, (256, 10), jnp.float32, -bound2, bound2)
    b2 = jax.random.uniform(k4, (10,), jnp.float32, -bound2, bound2)
    return w1, b1, w2, b2


if __name__ == "__main__":
    key = jax.random.PRNGKey(0)
    k_x, k_p = jax.random.split(key)

    B = 2
    x = jax.random.normal(k_x, (B, 1, 28, 28), dtype=jnp.float32)  # NCHW like PyTorch
    w1, b1, w2, b2 = init_params(k_p)

    out = net_forward(x, w1, b1, w2, b2)
    out = jax.block_until_ready(out)

    # Reference check in plain JAX f32 (kernel uses bf16 operands / f32 accumulate,
    # so compare with a tolerance that covers bf16 rounding).
    ref = jnp.maximum(x.reshape(B, -1) @ w1 + b1, 0.0) @ w2 + b2
    assert out.shape == (B, 10)
    assert jnp.allclose(out, ref, atol=2e-2, rtol=2e-2), "mismatch vs reference"

    print("KERNEL_OK")
</pallas_src>

<mosaic_0001>
module attributes {stable_mosaic.version = 11 : i64} {
  func.func @_mlp_kernel(%arg0: i32, %arg1: memref<8x784xf32, #tpu.memory_space<vmem>>, %arg2: memref<896x256xbf16, #tpu.memory_space<vmem>>, %arg3: memref<1x256xf32, #tpu.memory_space<vmem>>, %arg4: memref<256x128xbf16, #tpu.memory_space<vmem>>, %arg5: memref<1x128xf32, #tpu.memory_space<vmem>>, %arg6: memref<8x10xf32, #tpu.memory_space<vmem>>, %arg7: memref<8x896xbf16, #tpu.memory_space<vmem>>) attributes {dimension_semantics = [#tpu.dimension_semantics<parallel>], iteration_bounds = array<i64: 1>, scalar_prefetch = 0 : i64, scratch_operands = 1 : i64, tpu.core_type = #tpu.core_type<tc>, window_params = [{transform_indices = @transform_0, window_bounds = array<i64: 8, 784>}, {pipeline_mode = #tpu.pipeline_mode<synchronous>, transform_indices = @transform_1, window_bounds = array<i64: 896, 256>}, {pipeline_mode = #tpu.pipeline_mode<synchronous>, transform_indices = @transform_2, window_bounds = array<i64: 1, 256>}, {pipeline_mode = #tpu.pipeline_mode<synchronous>, transform_indices = @transform_3, window_bounds = array<i64: 256, 128>}, {pipeline_mode = #tpu.pipeline_mode<synchronous>, transform_indices = @transform_4, window_bounds = array<i64: 1, 128>}, {transform_indices = @transform_5, window_bounds = array<i64: 8, 10>}]} {
    %cst = arith.constant 0.000000e+00 : bf16
    %0 = vector.broadcast %cst : bf16 to vector<8x112xbf16>
    %c0 = arith.constant 0 : index
    %c784 = arith.constant 784 : index
    %1 = vector.load %arg7[%c0, %c784] : memref<8x896xbf16, #tpu.memory_space<vmem>>, vector<8x112xbf16>
    tpu.vector_store %arg7[%c0, %c784], %0 {strides = array<i32>} : memref<8x896xbf16, #tpu.memory_space<vmem>>, vector<8x112xbf16>,
    %c0_0 = arith.constant 0 : index
    %c0_1 = arith.constant 0 : index
    %2 = vector.load %arg1[%c0_0, %c0_1] : memref<8x784xf32, #tpu.memory_space<vmem>>, vector<8x784xf32>
    %3 = arith.truncf %2 : vector<8x784xf32> to vector<8x784xbf16>
    %c0_2 = arith.constant 0 : index
    %c0_3 = arith.constant 0 : index
    %4 = vector.load %arg7[%c0_2, %c0_3] : memref<8x896xbf16, #tpu.memory_space<vmem>>, vector<8x784xbf16>
    tpu.vector_store %arg7[%c0_2, %c0_3], %3 {strides = array<i32>} : memref<8x896xbf16, #tpu.memory_space<vmem>>, vector<8x784xbf16>,
    %c0_4 = arith.constant 0 : index
    %c0_5 = arith.constant 0 : index
    %5 = vector.load %arg7[%c0_4, %c0_5] : memref<8x896xbf16, #tpu.memory_space<vmem>>, vector<8x896xbf16>
    %c0_6 = arith.constant 0 : index
    %c0_7 = arith.constant 0 : index
    %6 = vector.load %arg2[%c0_6, %c0_7] : memref<896x256xbf16, #tpu.memory_space<vmem>>, vector<896x256xbf16>
    %cst_8 = arith.constant dense<0.000000e+00> : vector<8x256xf32>
    %7 = tpu.matmul %5, %6, %cst_8 {dimension_numbers = #tpu.dot_dimension_numbers<[1], [0], [0], [1], [0, 0, 1, 1], [], []>} : vector<8x896xbf16>, vector<896x256xbf16>, vector<8x256xf32> -> vector<8x256xf32>
    %c0_9 = arith.constant 0 : index
    %c0_10 = arith.constant 0 : index
    %8 = vector.load %arg3[%c0_9, %c0_10] : memref<1x256xf32, #tpu.memory_space<vmem>>, vector<1x256xf32>
    %9 = vector.broadcast %8 : vector<1x256xf32> to vector<8x256xf32>
    %10 = arith.addf %7, %9 : vector<8x256xf32>
    %cst_11 = arith.constant 0.000000e+00 : f32
    %11 = vector.broadcast %cst_11 : f32 to vector<8x256xf32>
    %12 = arith.maximumf %10, %11 : vector<8x256xf32>
    %13 = arith.truncf %12 : vector<8x256xf32> to vector<8x256xbf16>
    %c0_12 = arith.constant 0 : index
    %c0_13 = arith.constant 0 : index
    %14 = vector.load %arg4[%c0_12, %c0_13] : memref<256x128xbf16, #tpu.memory_space<vmem>>, vector<256x128xbf16>
    %cst_14 = arith.constant dense<0.000000e+00> : vector<8x128xf32>
    %15 = tpu.matmul %13, %14, %cst_14 {dimension_numbers = #tpu.dot_dimension_numbers<[1], [0], [0], [1], [0, 0, 1, 1], [], []>} : vector<8x256xbf16>, vector<256x128xbf16>, vector<8x128xf32> -> vector<8x128xf32>
    %c0_15 = arith.constant 0 : index
    %c0_16 = arith.constant 0 : index
    %16 = vector.load %arg5[%c0_15, %c0_16] : memref<1x128xf32, #tpu.memory_space<vmem>>, vector<1x128xf32>
    %17 = vector.broadcast %16 : vector<1x128xf32> to vector<8x128xf32>
    %18 = arith.addf %15, %17 : vector<8x128xf32>
    %19 = vector.extract_strided_slice %18 {offsets = [0, 0], sizes = [8, 10], strides = [1, 1]} : vector<8x128xf32> to vector<8x10xf32>
    %c0_17 = arith.constant 0 : index
    %c0_18 = arith.constant 0 : index
    %20 = vector.load %arg6[%c0_17, %c0_18] : memref<8x10xf32, #tpu.memory_space<vmem>>, vector<8x10xf32>
    tpu.vector_store %arg6[%c0_17, %c0_18], %19 {strides = array<i32>} : memref<8x10xf32, #tpu.memory_space<vmem>>, vector<8x10xf32>,
    return
  }
  func.func @transform_0(%arg0: i32) -> (i32, i32) {
    %c0_i32 = arith.constant 0 : i32
    %c0_i32_0 = arith.constant 0 : i32
    return %arg0, %c0_i32 : i32, i32
  }
  func.func @transform_1(%arg0: i32) -> (i32, i32) {
    %c0_i32 = arith.constant 0 : i32
    %c0_i32_0 = arith.constant 0 : i32
    %c0_i32_1 = arith.constant 0 : i32
    return %c0_i32, %c0_i32_0 : i32, i32
  }
  func.func @transform_2(%arg0: i32) -> (i32, i32) {
    %c0_i32 = arith.constant 0 : i32
    %c0_i32_0 = arith.constant 0 : i32
    %c0_i32_1 = arith.constant 0 : i32
    return %c0_i32, %c0_i32_0 : i32, i32
  }
  func.func @transform_3(%arg0: i32) -> (i32, i32) {
    %c0_i32 = arith.constant 0 : i32
    %c0_i32_0 = arith.constant 0 : i32
    %c0_i32_1 = arith.constant 0 : i32
    return %c0_i32, %c0_i32_0 : i32, i32
  }
  func.func @transform_4(%arg0: i32) -> (i32, i32) {
    %c0_i32 = arith.constant 0 : i32
    %c0_i32_0 = arith.constant 0 : i32
    %c0_i32_1 = arith.constant 0 : i32
    return %c0_i32, %c0_i32_0 : i32, i32
  }
  func.func @transform_5(%arg0: i32) -> (i32, i32) {
    %c0_i32 = arith.constant 0 : i32
    %c0_i32_0 = arith.constant 0 : i32
    return %arg0, %c0_i32 : i32, i32
  }
}

</mosaic_0001>

<bundles_post_ra>
// kernel: tpu_custom_call.1
= control target key start
LH: loop header
LB: loop body
LE: loop exit
PB: predicated region body
PF: predicated region fallthrough
CT: control target
= control target key end

     0   :  { %10 = vsyncpa [#allocation4], 0  ;;  %s1751_s0 = inlined_call_operand.hbm [shape: f32[8,784], index: 0, kind: input, shape index: {}]   ;;  %s1752_s1 = inlined_call_operand.hbm [shape: bf16[896,256], index: 1, kind: input, shape index: {}]   ;;  %s1753_s2 = inlined_call_operand.vmem [shape: f32[1,256], index: 2, kind: input, shape index: {}]   ;;  %s1754_s3 = inlined_call_operand.hbm [shape: bf16[256,128], index: 3, kind: input, shape index: {}]   ;;  %s1755_s4 = inlined_call_operand.vmem [shape: f32[1,128], index: 4, kind: input, shape index: {}]   ;;  %s1756_s5 = inlined_call_operand.hbm [shape: f32[8,10], index: 5, kind: output, shape index: {}]  }
   0x1   :  { %11 = vsyncpa [#allocation7], 0 }
   0x2   :  { %12 = vsyncpa [#allocation5], 0  ;;  %s1648_s18 = smov [#allocation6]   ;;  %s1554_s22 = scalar_lea.hbm %s1752_s1, 14336 }
   0x3   :  { %s28_s19 = sshll.u32 %s1648_s18, 4  ;;  %p1555_p0 = scmp.ne.s32.totalorder %s1752_s1, %s1554_s22  ;;  %s29_s19 = int_to_ptr.vmem [resolvable:$true] %s28_s19 }
   0x4   :  { %p1558_p1 = scmp.lt.u32.totalorder %s1554_s22, %s1752_s1 }
   0x6   :  { %p1560_p2 = pnand %p1558_p1, %p1555_p0 }
   0x8   :  { %1563 = shalt.err (!%p1560_p2)
}
   0x9   :  { %s1564_s27 = scalar_lea.vmem %s29_s19, 14336  ;;  %p1569_p4 = scmp.lt.s32.totalorder %s29_s19, %s29_s19 }
   0xa   :  { %p1565_p3 = scmp.ne.s32.totalorder %s29_s19, %s1564_s27  ;;  %p1570_p5 = scmp.lt.s32.totalorder %s1564_s27, %s1564_s27 }
   0xc   :  { %p1571_p6 = por %p1570_p5, %p1569_p4 }
   0xe   :  { %p1572_p7 = pnand %p1571_p6, %p1565_p3 }
  0x10   :  { %1575 = shalt.err (!%p1572_p7)
}
  0x11   :  { %s1649_s28 = smov 128   ;;  %s1650_s29 = smov 8  }
  0x12   :  { %34 = dma.hbm_to_vmem [thread:$0]  %s1752_s1, 14336, %s29_s19, [#allocation7], %s1649_s28, %s1649_s28, %s1650_s29  }
  0x13   :  { %s1651_s7 = smov [#allocation3]   ;;  %s1652_s9 = smov [#allocation8]  }
  0x14   :  { %s19_s8 = sshll.u32 %s1651_s7, 4  ;;  %s42_s10 = sshll.u32 %s1652_s9, 4  ;;  %s20_s8 = int_to_ptr.vmem [resolvable:$true] %s19_s8  ;;  %s43_s10 = int_to_ptr.vmem [resolvable:$true] %s42_s10 }
  0x15   :  { %s1576_s13 = scalar_lea.hbm %s1751_s0, 896 }
  0x16   :  { %p1577_p8 = scmp.ne.s32.totalorder %s1751_s0, %s1576_s13  ;;  %p1580_p9 = scmp.lt.u32.totalorder %s1576_s13, %s1751_s0 }
  0x18   :  { %p1582_p10 = pnand %p1580_p9, %p1577_p8 }
  0x1a   :  { %1585 = shalt.err (!%p1582_p10)
}
  0x1b   :  { %s1586_s1 = scalar_lea.vmem %s20_s8, 896  ;;  %p1591_p12 = scmp.lt.s32.totalorder %s20_s8, %s20_s8 }
  0x1c   :  { %p1587_p11 = scmp.ne.s32.totalorder %s20_s8, %s1586_s1  ;;  %p1592_p13 = scmp.lt.s32.totalorder %s1586_s1, %s1586_s1 }
  0x1e   :  { %p1593_p0 = por %p1592_p13, %p1591_p12 }
  0x20   :  { %p1594_p1 = pnand %p1593_p0, %p1587_p11 }
  0x22   :  { %1597 = shalt.err (!%p1594_p1)
}
  0x23   :  { %22 = dma.hbm_to_vmem [thread:$0]  %s1751_s0, 896, %s20_s8, [#allocation4]  }
  0x24   :  { %s1598_s22 = scalar_lea.hbm %s1754_s3, 2048 }
  0x25   :  { %p1599_p2 = scmp.ne.s32.totalorder %s1754_s3, %s1598_s22  ;;  %p1602_p3 = scmp.lt.u32.totalorder %s1598_s22, %s1754_s3 }
  0x27   :  { %p1604_p4 = pnand %p1602_p3, %p1599_p2 }
  0x29   :  { %1607 = shalt.err (!%p1604_p4)
}
  0x2a   :  { %s1608_s27 = scalar_lea.vmem %s43_s10, 2048  ;;  %p1613_p6 = scmp.lt.s32.totalorder %s43_s10, %s43_s10 }
  0x2b   :  { %p1609_p5 = scmp.ne.s32.totalorder %s43_s10, %s1608_s27  ;;  %p1614_p7 = scmp.lt.s32.totalorder %s1608_s27, %s1608_s27 }
  0x2d   :  { %p1615_p8 = por %p1614_p7, %p1613_p6 }
  0x2f   :  { %p1616_p9 = pnand %p1615_p8, %p1609_p5 }
  0x31   :  { %1619 = shalt.err (!%p1616_p9)
}
  0x32   :  { %s1653_s0 = smov 64   ;;  %s1654_s28 = smov 4  }
  0x33   :  { %48 = dma.hbm_to_vmem [thread:$0]  %s1754_s3, 2048, %s43_s10, [#allocation7], %s1653_s0, %s1653_s0, %s1654_s28  }
  0x34   :  { %1642 = dma.done.wait [#allocation4], 896  }
  0x35   :  { %1643 = vsyncadd [#allocation4], 4294966400 }
  0x36   :  { %1644 = dma.done.wait [#allocation7], 16384  }
  0x37   :  { %1645 = vsyncadd [#allocation7], 4294950912  ;;  %vm61_vm0 = vcmask 1043584   ;;  %v1655_v0 = vmov 0   ;;  %v1363_v1 = vld [vmem:[#allocation6 + $0x104] ss:$8 sps:$4 sm:$0xff]  }
  0x38   :  { %62 = vst.msk [vmem:[#allocation2 + $0x18] sm:$0xf] %vm61_vm0, %v1655_v0  ;;  %v1365_v2 = vld [vmem:[#allocation6 + $0x100] ss:$8 sps:$4 sm:$0xff]   ;;  %858 = vmatprep.subr.bf16.mxu0 %v1363_v1  ;;  %v1366_v3 = vld [vmem:[#allocation6 + $0x114] ss:$8 sps:$4 sm:$0xff]  }
  0x39   :  { %859 = vmatpush1.bf16.msra.mxu0 %v1365_v2  ;;  %v1368_v4 = vld [vmem:[#allocation6 + $0x110] ss:$8 sps:$4 sm:$0xff]   ;;  %v1369_v5 = vld [vmem:[#allocation6 + $0x124] ss:$8 sps:$4 sm:$0xff]   ;;  %v1371_v6 = vld [vmem:[#allocation6 + $0x120] ss:$8 sps:$4 sm:$0xff]  }
  0x3a   :  { %860 = vmatprep.subr.bf16.mxu0 %v1366_v3  ;;  %v1372_v7 = vld [vmem:[#allocation6 + $0x134] ss:$8 sps:$4 sm:$0xff]   ;;  %v1374_v8 = vld [vmem:[#allocation6 + $0x130] ss:$8 sps:$4 sm:$0xff]   ;;  %v1387_v9 = vld [vmem:[#allocation6 + $0x4] ss:$8 sps:$4 sm:$0xff]  }
  0x3b   :  { %v1389_v10 = vld [vmem:[#allocation6] ss:$8 sps:$4 sm:$0xff]   ;;  %v1375_v11 = vld [vmem:[#allocation6 + $0x144] ss:$8 sps:$4 sm:$0xff]   ;;  %817 = vmatprep.subr.bf16.mxu1 %v1387_v9  ;;  %v1393_v12 = vld [vmem:[#allocation6 + $0x14] ss:$8 sps:$4 sm:$0xff]  }
  0x3c   :  { %818 = vmatpush1.bf16.msra.mxu1 %v1389_v10  ;;  %v1395_v13 = vld [vmem:[#allocation6 + $0x10] ss:$8 sps:$4 sm:$0xff]   ;;  %v1377_v14 = vld [vmem:[#allocation6 + $0x140] ss:$8 sps:$4 sm:$0xff]   ;;  %v1378_v15 = vld [vmem:[#allocation6 + $0x154] ss:$8 sps:$4 sm:$0xff]  }
  0x3d   :  { %861 = vmatpush1.bf16.msra.mxu0 %v1368_v4  ;;  %819 = vmatprep.subr.bf16.mxu1 %v1393_v12  ;;  %v1399_v16 = vld [vmem:[#allocation6 + $0x24] ss:$8 sps:$4 sm:$0xff]   ;;  %v1401_v17 = vld [vmem:[#allocation6 + $0x20] ss:$8 sps:$4 sm:$0xff]   ;;  %v1380_v18 = vld [vmem:[#allocation6 + $0x150] ss:$8 sps:$4 sm:$0xff]  }
  0x3e   :  { %862 = vmatprep.subr.bf16.mxu0 %v1369_v5  ;;  %v1405_v19 = vld [vmem:[#allocation6 + $0x34] ss:$8 sps:$4 sm:$0xff]   ;;  %v1381_v20 = vld [vmem:[#allocation6 + $0x164] ss:$8 sps:$4 sm:$0xff]   ;;  %v1407_v21 = vld [vmem:[#allocation6 + $0x30] ss:$8 sps:$4 sm:$0xff]  }
  0x3f   :  { %v1383_v22 = vld [vmem:[#allocation6 + $0x160] ss:$8 sps:$4 sm:$0xff]   ;;  %v1411_v23 = vld [vmem:[#allocation6 + $0x44] ss:$8 sps:$4 sm:$0xff]   ;;  %v1384_v24 = vld [vmem:[#allocation6 + $0x174] ss:$8 sps:$4 sm:$0xff]  }
  0x40   :  { %820 = vmatpush1.bf16.msra.mxu1 %v1395_v13  ;;  %v1413_v25 = vld [vmem:[#allocation6 + $0x40] ss:$8 sps:$4 sm:$0xff]   ;;  %v1386_v26 = vld [vmem:[#allocation6 + $0x170] ss:$8 sps:$4 sm:$0xff]   ;;  %v1417_v27 = vld [vmem:[#allocation6 + $0x54] ss:$8 sps:$4 sm:$0xff]  }
  0x41   :  { %863 = vmatpush1.bf16.msra.mxu0 %v1371_v6  ;;  %821 = vmatprep.subr.bf16.mxu1 %v1399_v16  ;;  %v1390_v28 = vld [vmem:[#allocation6 + $0x184] ss:$8 sps:$4 sm:$0xff]   ;;  %v1419_v29 = vld [vmem:[#allocation6 + $0x50] ss:$8 sps:$4 sm:$0xff]   ;;  %v1392_v30 = vld [vmem:[#allocation6 + $0x180] ss:$8 sps:$4 sm:$0xff]  }
  0x42   :  { %864 = vmatprep.subr.bf16.mxu0 %v1372_v7  ;;  %v1423_v31 = vld [vmem:[#allocation6 + $0x64] ss:$8 sps:$4 sm:$0xff]   ;;  %v1396_v32 = vld [vmem:[#allocation6 + $0x194] ss:$8 sps:$4 sm:$0xff]   ;;  %v1398_v33 = vld [vmem:[#allocation6 + $0x190] ss:$8 sps:$4 sm:$0xff]  }
  0x43   :  { %v1724_v34 = vld [vmem:[#allocation3 + $0x10] sm:$0xff]  ;;  %v66_v35 = vld [vmem:[#allocation3 + $0x18] sm:$0xff]  ;;  %v63_v57 = vld [vmem:[#allocation3] sm:$0xff]  ;;  %vm102_vm1 = vcmask 125952   ;;  %s1656_s8 = smov [#allocation9]   ;;  %vm1160_vm2 = vcmask 80896  }
  0x44   :  { %822 = vmatpush1.bf16.msra.mxu1 %v1401_v17  ;;  %v1425_v36 = vld [vmem:[#allocation6 + $0x60] ss:$8 sps:$4 sm:$0xff]   ;;  %v1429_v37 = vld [vmem:[#allocation6 + $0x74] ss:$8 sps:$4 sm:$0xff]   ;;  %v1402_v38 = vld [vmem:[#allocation6 + $0x1a4] ss:$8 sps:$4 sm:$0xff]   ;;  %v1548_v39 = vpack.c.bf16 %v66_v35, %v66_v35  ;;  %v1550_v4 = vpack.c.bf16 %v1724_v34, %v1724_v34  ;;  %v1551_v17 = vpack.c.bf16 %v63_v57, %v63_v57 }
  0x45   :  { %865 = vmatpush1.bf16.msra.mxu0 %v1374_v8  ;;  %823 = vmatprep.subr.bf16.mxu1 %v1405_v19  ;;  %v1404_v40 = vld [vmem:[#allocation6 + $0x1a0] ss:$8 sps:$4 sm:$0xff]   ;;  %v1431_v41 = vld [vmem:[#allocation6 + $0x70] ss:$8 sps:$4 sm:$0xff]   ;;  %v1435_v42 = vld [vmem:[#allocation6 + $0x84] ss:$8 sps:$4 sm:$0xff]  }
  0x46   :  { %866 = vmatprep.subr.bf16.mxu0 %v1375_v11  ;;  %890 = vmatprep.mubr.bf16.mxu0 %v1548_v39  ;;  %v1408_v43 = vld [vmem:[#allocation6 + $0x1b4] ss:$8 sps:$4 sm:$0xff]   ;;  %v1410_v44 = vld [vmem:[#allocation6 + $0x1b0] ss:$8 sps:$4 sm:$0xff]   ;;  %v1437_v45 = vld [vmem:[#allocation6 + $0x80] ss:$8 sps:$4 sm:$0xff]  }
  0x47   :  { %v1441_v46 = vld [vmem:[#allocation6 + $0x94] ss:$8 sps:$4 sm:$0xff]   ;;  %v1414_v47 = vld [vmem:[#allocation6 + $0x1c4] ss:$8 sps:$4 sm:$0xff]   ;;  %v1416_v48 = vld [vmem:[#allocation6 + $0x1c0] ss:$8 sps:$4 sm:$0xff]  }
  0x48   :  { %824 = vmatpush1.bf16.msra.mxu1 %v1407_v21  ;;  %v1443_v49 = vld [vmem:[#allocation6 + $0x90] ss:$8 sps:$4 sm:$0xff]   ;;  %v1447_v50 = vld [vmem:[#allocation6 + $0xa4] ss:$8 sps:$4 sm:$0xff]   ;;  %v1420_v51 = vld [vmem:[#allocation6 + $0x1d4] ss:$8 sps:$4 sm:$0xff]  }
  0x49   :  { %867 = vmatpush1.bf16.msra.mxu0 %v1377_v14  ;;  %825 = vmatprep.subr.bf16.mxu1 %v1411_v23  ;;  %v1422_v52 = vld [vmem:[#allocation6 + $0x1d0] ss:$8 sps:$4 sm:$0xff]   ;;  %v1449_v53 = vld [vmem:[#allocation6 + $0xa0] ss:$8 sps:$4 sm:$0xff]   ;;  %v1453_v54 = vld [vmem:[#allocation6 + $0xb4] ss:$8 sps:$4 sm:$0xff]  }
  0x4a   :  { %868 = vmatprep.subr.bf16.mxu0 %v1378_v15  ;;  %v1426_v55 = vld [vmem:[#allocation6 + $0x1e4] ss:$8 sps:$4 sm:$0xff]   ;;  %v1455_v56 = vld [vmem:[#allocation6 + $0xb0] ss:$8 sps:$4 sm:$0xff]   ;;  %v1428_v59 = vld [vmem:[#allocation6 + $0x1e0] ss:$8 sps:$4 sm:$0xff]  }
  0x4b   :  { %v64_v58 = vld [vmem:[#allocation3 + $0x8] sm:$0xff]  ;;  %v1459_v60 = vld [vmem:[#allocation6 + $0xc4] ss:$8 sps:$4 sm:$0xff]   ;;  %v1461_v63 = vld [vmem:[#allocation6 + $0xc0] ss:$8 sps:$4 sm:$0xff]   ;;  %s1168_s9 = sshll.u32 %s1656_s8, 4  ;;  %s1169_s9 = int_to_ptr.vmem [resolvable:$true] %s1168_s9 }
  0x4c   :  { %826 = vmatpush1.bf16.msra.mxu1 %v1413_v25  ;;  %v1432_v61 = vld [vmem:[#allocation6 + $0x1f4] ss:$8 sps:$4 sm:$0xff]   ;;  %v1549_v62 = vpack.c.bf16 %v64_v58, %v64_v58  ;;  %v1434_v1 = vld [vmem:[#allocation6 + $0x1f0] ss:$8 sps:$4 sm:$0xff]   ;;  %v1440_v3 = vld [vmem:[#allocation6 + $0x204] ss:$8 sps:$4 sm:$0xff]   ;;  %p1625_p11 = scmp.lt.s32.totalorder %s1169_s9, %s1169_s9 }
  0x4d   :  { %869 = vmatpush1.bf16.msra.mxu0 %v1380_v18  ;;  %827 = vmatprep.subr.bf16.mxu1 %v1417_v27  ;;  %v1465_v2 = vld [vmem:[#allocation6 + $0xd4] ss:$8 sps:$4 sm:$0xff]   ;;  %v1467_v5 = vld [vmem:[#allocation6 + $0xd0] ss:$8 sps:$4 sm:$0xff]   ;;  %v1438_v6 = vld [vmem:[#allocation6 + $0x200] ss:$8 sps:$4 sm:$0xff]  }
  0x4e   :  { %870 = vmatprep.subr.bf16.mxu0 %v1381_v20  ;;  %849 = vmatprep.mubr.bf16.mxu1 %v1549_v62  ;;  %v1471_v7 = vld [vmem:[#allocation6 + $0xe4] ss:$8 sps:$4 sm:$0xff]   ;;  %v1446_v8 = vld [vmem:[#allocation6 + $0x214] ss:$8 sps:$4 sm:$0xff]   ;;  %v1473_v9 = vld [vmem:[#allocation6 + $0xe0] ss:$8 sps:$4 sm:$0xff]  }
  0x4f   :  { %v1444_v10 = vld [vmem:[#allocation6 + $0x210] ss:$8 sps:$4 sm:$0xff]   ;;  %v1477_v11 = vld [vmem:[#allocation6 + $0xf4] ss:$8 sps:$4 sm:$0xff]   ;;  %v1452_v12 = vld [vmem:[#allocation6 + $0x224] ss:$8 sps:$4 sm:$0xff]  }
  0x50   :  { %828 = vmatpush1.bf16.msra.mxu1 %v1419_v29  ;;  %v1479_v13 = vld [vmem:[#allocation6 + $0xf0] ss:$8 sps:$4 sm:$0xff]   ;;  %v1450_v14 = vld [vmem:[#allocation6 + $0x220] ss:$8 sps:$4 sm:$0xff]   ;;  %v1485_v15 = vld [vmem:[#allocation6 + $0x304] ss:$8 sps:$4 sm:$0xff]  }
  0x51   :  { %871 = vmatpush1.bf16.msra.mxu0 %v1383_v22  ;;  %829 = vmatprep.subr.bf16.mxu1 %v1423_v31  ;;  %v1458_v16 = vld [vmem:[#allocation6 + $0x234] ss:$8 sps:$4 sm:$0xff]   ;;  %v1456_v18 = vld [vmem:[#allocation6 + $0x230] ss:$8 sps:$4 sm:$0xff]   ;;  %v1483_v19 = vld [vmem:[#allocation6 + $0x300] ss:$8 sps:$4 sm:$0xff]  }
  0x52   :  { %872 = vmatprep.subr.bf16.mxu0 %v1384_v24  ;;  %v1464_v20 = vld [vmem:[#allocation6 + $0x244] ss:$8 sps:$4 sm:$0xff]   ;;  %v1491_v21 = vld [vmem:[#allocation6 + $0x314] ss:$8 sps:$4 sm:$0xff]   ;;  %v1489_v22 = vld [vmem:[#allocation6 + $0x310] ss:$8 sps:$4 sm:$0xff]  }
  0x53   :  { %v69_v23 = vld [vmem:[#allocation3 + $0x30] sm:$0xff]  ;;  %v1728_v24 = vld [vmem:[#allocation3 + $0x20] sm:$0xff]  ;;  %v68_v25 = vld [vmem:[#allocation3 + $0x28] sm:$0xff]  ;;  %s1620_s10 = scalar_lea.vmem %s1169_s9, 128 }
  0x54   :  { %830 = vmatpush1.bf16.msra.mxu1 %v1425_v36  ;;  %v1497_v27 = vld [vmem:[#allocation6 + $0x324] ss:$8 sps:$4 sm:$0xff]   ;;  %v1470_v29 = vld [vmem:[#allocation6 + $0x254] ss:$8 sps:$4 sm:$0xff]   ;;  %v1495_v31 = vld [vmem:[#allocation6 + $0x320] ss:$8 sps:$4 sm:$0xff]   ;;  %p1621_p10 = scmp.ne.s32.totalorder %s1169_s9, %s1620_s10  ;;  %p1626_p12 = scmp.lt.s32.totalorder %s1620_s10, %s1620_s10 }
  0x55   :  { %873 = vmatpush1.bf16.msra.mxu0 %v1386_v26  ;;  %831 = vmatprep.subr.bf16.mxu1 %v1429_v37  ;;  %v1462_v26 = vld [vmem:[#allocation6 + $0x240] ss:$8 sps:$4 sm:$0xff]   ;;  %v1476_v34 = vld [vmem:[#allocation6 + $0x264] ss:$8 sps:$4 sm:$0xff]   ;;  %v1501_v35 = vld [vmem:[#allocation6 + $0x330] ss:$8 sps:$4 sm:$0xff]  }
  0x56   :  { %874 = vmatprep.subr.bf16.mxu0 %v1390_v28  ;;  %v1321_v28 = vpack.c.bf16 %v69_v23, %v69_v23  ;;  %v1474_v36 = vld [vmem:[#allocation6 + $0x260] ss:$8 sps:$4 sm:$0xff]   ;;  %v1509_v37 = vld [vmem:[#allocation6 + $0x344] ss:$8 sps:$4 sm:$0xff]   ;;  %v1480_v39 = vld [vmem:[#allocation6 + $0x270] ss:$8 sps:$4 sm:$0xff]   ;;  %p1627_p13 = por %p1626_p12, %p1625_p11 }
  0x57   :  { %v1518_v57 = vld [vmem:[#allocation6 + $0x2d4] ss:$8 sps:$4 sm:$0xff]   ;;  %v1516_v58 = vld [vmem:[#allocation6 + $0x2d0] ss:$8 sps:$4 sm:$0xff]  }
  0x58   :  { %832 = vmatpush1.bf16.msra.mxu1 %v1431_v41  ;;  %103 = vst.msk [vmem:[#allocation2 + $0x18] sm:$0xf] %vm102_vm1, %v1321_v28  ;;  %v1488_v41 = vld [vmem:[#allocation6 + $0x284] ss:$8 sps:$4 sm:$0xff]   ;;  %v1528_v62 = vld [vmem:[#allocation6 + $0x2f0] ss:$8 sps:$4 sm:$0xff]   ;;  %p1628_p0 = pnand %p1627_p13, %p1621_p10 }
  0x59   :  { %875 = vmatpush1.bf16.msra.mxu0 %v1392_v30  ;;  %833 = vmatprep.subr.bf16.mxu1 %v1435_v42  ;;  %v1552_v30 = vpack.c.bf16 %v68_v25, %v68_v25  ;;  %v1513_v42 = vld [vmem:[#allocation6 + $0x350] ss:$8 sps:$4 sm:$0xff]   ;;  %v222_v25 = vlaneseq  ;;  %v220_v28 = vld [vmem:[%s1753_s2] sm:$0x3] }
  0x5a   :  { %876 = vmatprep.subr.bf16.mxu0 %v1396_v32  ;;  %v1468_v32 = vld [vmem:[#allocation6 + $0x250] ss:$8 sps:$4 sm:$0xff]  }
  0x5c   :  { %834 = vmatpush1.bf16.msra.mxu1 %v1437_v45  ;;  %v1494_v45 = vld [vmem:[#allocation6 + $0x294] ss:$8 sps:$4 sm:$0xff]  }
  0x5d   :  { %877 = vmatpush1.bf16.msra.mxu0 %v1398_v33  ;;  %835 = vmatprep.subr.bf16.mxu1 %v1441_v46  ;;  %v1503_v33 = vld [vmem:[#allocation6 + $0x334] ss:$8 sps:$4 sm:$0xff]   ;;  %v1519_v46 = vld [vmem:[#allocation6 + $0x360] ss:$8 sps:$4 sm:$0xff]  }
  0x5e   :  { %878 = vmatprep.subr.bf16.mxu0 %v1402_v38  ;;  %v1507_v38 = vld [vmem:[#allocation6 + $0x340] ss:$8 sps:$4 sm:$0xff]  }
  0x60   :  { %836 = vmatpush1.bf16.msra.mxu1 %v1443_v49  ;;  %v1500_v49 = vld [vmem:[#allocation6 + $0x2a4] ss:$8 sps:$4 sm:$0xff]  }
  0x61   :  { %879 = vmatpush1.bf16.msra.mxu0 %v1404_v40  ;;  %837 = vmatprep.subr.bf16.mxu1 %v1447_v50  ;;  %v1515_v40 = vld [vmem:[#allocation6 + $0x354] ss:$8 sps:$4 sm:$0xff]   ;;  %v1525_v50 = vld [vmem:[#allocation6 + $0x370] ss:$8 sps:$4 sm:$0xff]  }
  0x62   :  { %880 = vmatprep.subr.bf16.mxu0 %v1408_v43  ;;  %v1486_v43 = vld [vmem:[#allocation6 + $0x280] ss:$8 sps:$4 sm:$0xff]  }
  0x64   :  { %838 = vmatpush1.bf16.msra.mxu1 %v1449_v53  ;;  %v1531_v53 = vld [vmem:[#allocation2 + $0x18] ss:$0 sps:$4 sm:$0xff]  }
  0x65   :  { %881 = vmatpush1.bf16.msra.mxu0 %v1410_v44  ;;  %839 = vmatprep.subr.bf16.mxu1 %v1453_v54  ;;  %v1521_v44 = vld [vmem:[#allocation6 + $0x364] ss:$8 sps:$4 sm:$0xff]   ;;  %v1504_v54 = vld [vmem:[#allocation6 + $0x2b0] ss:$8 sps:$4 sm:$0xff]  }
  0x66   :  { %882 = vmatprep.subr.bf16.mxu0 %v1414_v47  ;;  %v1492_v47 = vld [vmem:[#allocation6 + $0x290] ss:$8 sps:$4 sm:$0xff]  }
  0x68   :  { %840 = vmatpush1.bf16.msra.mxu1 %v1455_v56  ;;  %v1510_v56 = vld [vmem:[#allocation6 + $0x2c0] ss:$8 sps:$4 sm:$0xff]  }
  0x69   :  { %883 = vmatpush1.bf16.msra.mxu0 %v1416_v48  ;;  %841 = vmatprep.subr.bf16.mxu1 %v1459_v60  ;;  %v1527_v48 = vld [vmem:[#allocation6 + $0x374] ss:$8 sps:$4 sm:$0xff]   ;;  %v1522_v60 = vld [vmem:[#allocation6 + $0x2e0] ss:$8 sps:$4 sm:$0xff]  }
  0x6a   :  { %884 = vmatprep.subr.bf16.mxu0 %v1420_v51  ;;  %v1498_v51 = vld [vmem:[#allocation6 + $0x2a0] ss:$8 sps:$4 sm:$0xff]  }
  0x6c   :  { %842 = vmatpush1.bf16.msra.mxu1 %v1461_v63  ;;  %v1553_v63 = vpack.c.bf16 %v1728_v24, %v1728_v24 }
  0x6d   :  { %885 = vmatpush1.bf16.msra.mxu0 %v1422_v52  ;;  %843 = vmatprep.subr.bf16.mxu1 %v1465_v2  ;;  %v1506_v52 = vld [vmem:[#allocation6 + $0x2b4] ss:$8 sps:$4 sm:$0xff]   ;;  %v1533_v2 = vld [vmem:[#allocation8] sm:$0xff]  }
  0x6e   :  { %886 = vmatprep.subr.bf16.mxu0 %v1426_v55  ;;  %v1512_v55 = vld [vmem:[#allocation6 + $0x2c4] ss:$8 sps:$4 sm:$0xff]  }
  0x70   :  { %844 = vmatpush1.bf16.msra.mxu1 %v1467_v5  ;;  %v1536_v5 = vld [vmem:[#allocation8 + $0x50] sm:$0xff]  }
  0x71   :  { %887 = vmatpush1.bf16.msra.mxu0 %v1428_v59  ;;  %845 = vmatprep.subr.bf16.mxu1 %v1471_v7  ;;  %v1524_v59 = vld [vmem:[#allocation6 + $0x2e4] ss:$8 sps:$4 sm:$0xff]   ;;  %v1538_v7 = vld [vmem:[#allocation8 + $0x58] sm:$0xff]  }
  0x72   :  { %888 = vmatprep.subr.bf16.mxu0 %v1432_v61  ;;  %v1530_v61 = vld [vmem:[#allocation6 + $0x2f4] ss:$8 sps:$4 sm:$0xff]  }
  0x74   :  { %846 = vmatpush1.bf16.msra.mxu1 %v1473_v9  ;;  %v1540_v9 = vld [vmem:[#allocation8 + $0x60] sm:$0xff]  }
  0x75   :  { %889 = vmatpush1.bf16.msra.mxu0 %v1434_v1  ;;  %847 = vmatprep.subr.bf16.mxu1 %v1477_v11  ;;  %v1532_v1 = vld [vmem:[#allocation8 + $0x40] sm:$0xff]   ;;  %v1542_v11 = vld [vmem:[#allocation8 + $0x68] sm:$0xff]  }
  0x76   :  { %899 = vmatprep.subr.bf16.mxu0 %v1440_v3  ;;  %v1534_v3 = vld [vmem:[#allocation8 + $0x48] sm:$0xff]  }
  0x78   :  { %891 = vmatmul.mubr.bf16.vlgmr.msra.gmra.mrb[0].mxu0 %v1550_v4  ;;  %848 = vmatpush1.bf16.msra.mxu1 %v1479_v13  ;;  %v1535_v4 = vld [vmem:[#allocation8 + $0x8] sm:$0xff]   ;;  %v1544_v13 = vld [vmem:[#allocation8 + $0x70] sm:$0xff]  }
  0x79   :  { %900 = vmatpush1.bf16.msra.mxu0 %v1438_v6  ;;  %940 = vmatprep.subr.bf16.mxu1 %v1485_v15  ;;  %v1537_v6 = vld [vmem:[#allocation8 + $0x10] sm:$0xff]   ;;  %v1546_v15 = vld [vmem:[#allocation8 + $0x78] sm:$0xff]  }
  0x7a   :  { %901 = vmatprep.subr.bf16.mxu0 %v1446_v8  ;;  %931 = vmatprep.mubr.bf16.mxu0 %v1552_v30  ;;  %v1539_v8 = vld [vmem:[#allocation8 + $0x18] sm:$0xff]  }
  0x7b   :  { %850 = vmatmul.mubr.bf16.vlgmr.msra.gmra.mrb[0].mxu1 %v1551_v17 }
  0x7c   :  { %941 = vmatpush1.bf16.msra.mxu1 %v1483_v19  ;;  %972 = vmatprep.mubr.bf16.mxu1 %v1655_v0  ;;  %v1482_v0 = vld [vmem:[#allocation6 + $0x274] ss:$8 sps:$4 sm:$0xff]  }
  0x7d   :  { %902 = vmatpush1.bf16.msra.mxu0 %v1444_v10  ;;  %942 = vmatprep.subr.bf16.mxu1 %v1491_v21  ;;  %v1541_v10 = vld [vmem:[#allocation8 + $0x20] sm:$0xff]  }
  0x7e   :  { %903 = vmatprep.subr.bf16.mxu0 %v1452_v12  ;;  %v1543_v12 = vld [vmem:[#allocation8 + $0x28] sm:$0xff]  }
  0x80   :  { %943 = vmatpush1.bf16.msra.mxu1 %v1489_v22 }
  0x81   :  { %904 = vmatpush1.bf16.msra.mxu0 %v1450_v14  ;;  %944 = vmatprep.subr.bf16.mxu1 %v1497_v27  ;;  %v1545_v14 = vld [vmem:[#allocation8 + $0x30] sm:$0xff]  }
  0x82   :  { %905 = vmatprep.subr.bf16.mxu0 %v1458_v16  ;;  %v1547_v16 = vld [vmem:[#allocation8 + $0x38] sm:$0xff]  }
  0x84   :  { %945 = vmatpush1.bf16.msra.mxu1 %v1495_v31 }
  0x85   :  { %906 = vmatpush1.bf16.msra.mxu0 %v1456_v18  ;;  %946 = vmatprep.subr.bf16.mxu1 %v1503_v33 }
  0x86   :  { %907 = vmatprep.subr.bf16.mxu0 %v1464_v20 }
  0x88   :  { %947 = vmatpush1.bf16.msra.mxu1 %v1501_v35 }
  0x89   :  { %908 = vmatpush1.bf16.msra.mxu0 %v1462_v26  ;;  %948 = vmatprep.subr.bf16.mxu1 %v1509_v37  ;;  %v223_v26 = vshrl.u32 %v222_v25, 7 }
  0x8a   :  { %909 = vmatprep.subr.bf16.mxu0 %v1470_v29 }
  0x8b   :  { %v224_v27 = vsub.s32 0, %v223_v26  ;;  %v228_v29 = vsub.s32 1, %v223_v26 }
  0x8c   :  { %949 = vmatpush1.bf16.msra.mxu1 %v1507_v38 }
  0x8d   :  { %910 = vmatpush1.bf16.msra.mxu0 %v1468_v32  ;;  %950 = vmatprep.subr.bf16.mxu1 %v1515_v40  ;;  %v225_v30 = vrot.slane %v220_v28, %v224_v27  ;;  %v229_v31 = vrot.slane %v220_v28, %v228_v29 }
  0x8e   :  { %911 = vmatprep.subr.bf16.mxu0 %v1476_v34 }
  0x90   :  { %951 = vmatpush1.bf16.msra.mxu1 %v1513_v42 }
  0x91   :  { %912 = vmatpush1.bf16.msra.mxu0 %v1474_v36  ;;  %952 = vmatprep.subr.bf16.mxu1 %v1521_v44 }
  0x92   :  { %913 = vmatprep.subr.bf16.mxu0 %v1482_v0 }
  0x94   :  { %953 = vmatpush1.bf16.msra.mxu1 %v1519_v46  ;;  %v1301_v46 = vld [vmem:[%s1755_s4] ss:$0 sm:$0xff] }
  0x95   :  { %914 = vmatpush1.bf16.msra.mxu0 %v1480_v39  ;;  %954 = vmatprep.subr.bf16.mxu1 %v1527_v48 }
  0x96   :  { %915 = vmatprep.subr.bf16.mxu0 %v1488_v41 }
  0x98   :  { %955 = vmatpush1.bf16.msra.mxu1 %v1525_v50 }
  0x99   :  { %916 = vmatpush1.bf16.msra.mxu0 %v1486_v43  ;;  %1322 = vmatprep.subr.bf16.mxu1 %v1532_v1 }
  0x9a   :  { %917 = vmatprep.subr.bf16.mxu0 %v1494_v45 }
  0x9b   :  { %973 = vmatmul.mubr.bf16.vlgmr.msra.gmra.mrb[4].mxu1 %v1531_v53 }
  0x9c   :  { %1323 = vmatpush3.bf16.msra.mxu1 %v1533_v2 }
  0x9d   :  { %918 = vmatpush1.bf16.msra.mxu0 %v1492_v47  ;;  %1324 = vmatprep.subr.bf16.mxu1 %v1534_v3 }
  0x9e   :  { %919 = vmatprep.subr.bf16.mxu0 %v1500_v49 }
  0xa0   :  { %1325 = vmatpush3.bf16.msra.mxu1 %v1535_v4 }
  0xa1   :  { %920 = vmatpush1.bf16.msra.mxu0 %v1498_v51  ;;  %1326 = vmatprep.subr.bf16.mxu1 %v1536_v5 }
  0xa2   :  { %921 = vmatprep.subr.bf16.mxu0 %v1506_v52 }
  0xa4   :  { %1327 = vmatpush3.bf16.msra.mxu1 %v1537_v6 }
  0xa5   :  { %922 = vmatpush1.bf16.msra.mxu0 %v1504_v54  ;;  %1328 = vmatprep.subr.bf16.mxu1 %v1538_v7 }
  0xa6   :  { %923 = vmatprep.subr.bf16.mxu0 %v1512_v55 }
  0xa8   :  { %1329 = vmatpush3.bf16.msra.mxu1 %v1539_v8 }
  0xa9   :  { %924 = vmatpush1.bf16.msra.mxu0 %v1510_v56  ;;  %1330 = vmatprep.subr.bf16.mxu1 %v1540_v9 }
  0xaa   :  { %925 = vmatprep.subr.bf16.mxu0 %v1518_v57 }
  0xac   :  { %1331 = vmatpush3.bf16.msra.mxu1 %v1541_v10 }
  0xad   :  { %926 = vmatpush1.bf16.msra.mxu0 %v1516_v58  ;;  %1332 = vmatprep.subr.bf16.mxu1 %v1542_v11 }
  0xae   :  { %927 = vmatprep.subr.bf16.mxu0 %v1524_v59 }
  0xb0   :  { %1333 = vmatpush3.bf16.msra.mxu1 %v1543_v12 }
  0xb1   :  { %928 = vmatpush1.bf16.msra.mxu0 %v1522_v60  ;;  %1334 = vmatprep.subr.bf16.mxu1 %v1544_v13 }
  0xb2   :  { %929 = vmatprep.subr.bf16.mxu0 %v1530_v61 }
  0xb4   :  { %1335 = vmatpush3.bf16.msra.mxu1 %v1545_v14 }
  0xb5   :  { %930 = vmatpush1.bf16.msra.mxu0 %v1528_v62  ;;  %1336 = vmatprep.subr.bf16.mxu1 %v1546_v15 }
  0xb8   :  { %932 = vmatmul.mubr.bf16.vlgmr.msra.gmra.mrb[0].mxu0 %v1553_v63  ;;  %1337 = vmatpush3.bf16.msra.mxu1 %v1547_v16 }
 0x14e   :  { %v851_v17 = vpop.f32.mrb[0].mxu1 }
 0x14f   :  { %v853_v18 = vpop.f32.mrb[1].mxu1  ;;  %v852_v32 = vadd.f32 %v851_v17, %v225_v30 }
 0x150   :  { %v855_v19 = vpop.f32.mrb[2].mxu1  ;;  %v854_v33 = vadd.f32 %v853_v18, %v229_v31 }
 0x151   :  { %v856_v20 = vpop.f32.mrb[3].mxu1 }
 0x16e   :  { %v974_v21 = vpop.f32.mrb[4].mxu1 }
 0x16f   :  { %v976_v22 = vpop.f32.mrb[5].mxu1 }
 0x170   :  { %v978_v23 = vpop.f32.mrb[6].mxu1 }
 0x171   :  { %v979_v24 = vpop.f32.mrb[7].mxu1 }
 0x18b   :  { %v933_v34 = vpop.f32.mrb[0].mxu0 }
 0x18c   :  { %v1345_v35 = vadd.f32 %v933_v34, %v852_v32  ;;  %v935_v36 = vpop.f32.mrb[1].mxu0 }
 0x18d   :  { %v1348_v37 = vadd.f32 %v935_v36, %v854_v33  ;;  %v937_v0 = vpop.f32.mrb[2].mxu0 }
 0x18e   :  { %v1346_v38 = vadd.f32 %v1345_v35, %v974_v21  ;;  %v938_v39 = vpop.f32.mrb[3].mxu0 }
 0x18f   :  { %v1349_v40 = vadd.f32 %v1348_v37, %v976_v22 }
 0x190   :  { %v981_v41 = vmax.f32 %v1346_v38, 0.0 }
 0x191   :  { %v982_v42 = vmax.f32 %v1349_v40, 0.0 }
 0x192   :  { %v983_v44 = vpack.c.bf16 %v981_v41, %v981_v41 }
 0x193   :  { %v984_v43 = vpack.c.bf16 %v982_v42, %v982_v42 }
 0x195   :  { %1152 = vmatprep.mubr.bf16.mxu1 %v984_v43 }
 0x196   :  { %1153 = vmatmul.mubr.bf16.vlgmr.msra.gmra.mrb[8].mxu1 %v983_v44 }
 0x269   :  { %v1338_v45 = vpop.f32.mrb[8].mxu1 }
 0x26a   :  { %v1339_v47 = vpop.f32.mrb[9].mxu1 }
 0x26b   :  { %v1340_v48 = vadd.f32 %v1339_v47, %v1338_v45  ;;  %v1341_v49 = vpop.f32.mrb[10].mxu1 }
 0x26c   :  { %v1342_v50 = vpop.f32.mrb[11].mxu1 }
 0x26d   :  { %v1155_v51 = vadd.f32 %v1340_v48, %v1301_v46 }
 0x26f   :  { %1161 = vst.msk [vmem:[#allocation9] sm:$0xff] %vm1160_vm2, %v1155_v51 }
 0x270   :  { %1631 = shalt.err (!%p1628_p0)
}
 0x271   :  { %s1632_s4 = scalar_lea.hbm %s1756_s5, 128 }
 0x272   :  { %p1633_p1 = scmp.ne.s32.totalorder %s1756_s5, %s1632_s4  ;;  %p1636_p2 = scmp.lt.u32.totalorder %s1632_s4, %s1756_s5 }
 0x274   :  { %p1638_p3 = pnand %p1636_p2, %p1633_p1 }
 0x276   :  { %1641 = shalt.err (!%p1638_p3)
}
 0x277   :  { %1171 = dma.vmem_to_hbm [thread:$0]  %s1169_s9, 128, %s1756_s5, [#allocation5]  }
 0x278   :  { %1646 = dma.done.wait [#allocation5], 128  }
 0x279   :  { %1647 = vsyncadd [#allocation5], 4294967168 }
 0x27a   :  { %1175 = vsyncpa [#allocation4], 1 }
 0x27b   :  { %1176 = vsyncpa [#allocation7], 1 }
 0x27c   :  { %1177 = vsyncpa [#allocation5], 1 }

</bundles_post_ra>
